<compile_context>
chip_gen: v7x
topology: tpu7x:2x2x1
jax: 0.10.0
libtpu: 0.0.40
codegen_flags: <defaults>
</compile_context>

<pallas_src>
import functools

import jax
import jax.numpy as jnp
from jax.experimental import pallas as pl
from jax.experimental.pallas import tpu as pltpu


def _round_up(x, m):
    return ((x + m - 1) // m) * m


def _label_smooth_kernel(pred_ref, tgt_ref, out_ref, *,
                         confidence, smooth_factor, loss_weight,
                         reduction, total_n):
    i = pl.program_id(0)
    pred = pred_ref[...].astype(jnp.float32)        # (T, C)
    tgt = tgt_ref[...]                              # (T, 1) int32
    t, c = pred.shape

    # --- log-sum-exp over the class (lane) axis ---
    m = jnp.max(pred, axis=-1, keepdims=True)                         # (T,1)
    lse = m + jnp.log(jnp.sum(jnp.exp(pred - m), axis=-1, keepdims=True))

    # --- algebraic form of -sum(smooth_t * log_softmax(pred), axis=-1) ---
    #   smooth_t = one_hot*confidence + smooth_factor
    #   loss = -(confidence*(pred_t - lse) + smooth_factor*(sum(pred) - C*lse))
    class_ids = jax.lax.broadcasted_iota(jnp.int32, (t, c), 1)
    pred_t = jnp.sum(jnp.where(class_ids == tgt, pred, 0.0),
                     axis=-1, keepdims=True)                          # (T,1)
    sum_pred = jnp.sum(pred, axis=-1, keepdims=True)                  # (T,1)
    loss = -(confidence * (pred_t - lse)
             + smooth_factor * (sum_pred - c * lse))                  # (T,1)

    # --- mask rows that are padding of the ragged last tile ---
    row_ids = i * t + jax.lax.broadcasted_iota(jnp.int32, (t, 1), 0)
    loss = jnp.where(row_ids < total_n, loss, 0.0)

    if reduction in ("mean", "sum"):
        @pl.when(i == 0)
        def _():
            out_ref[...] = jnp.zeros_like(out_ref)

        out_ref[...] += jnp.sum(loss, axis=(0, 1), keepdims=True)

        @pl.when(i == pl.num_programs(0) - 1)
        def _():
            scale = (loss_weight / total_n) if reduction == "mean" else loss_weight
            out_ref[...] = out_ref[...] * scale
    else:  # 'none'
        out_ref[...] = loss_weight * loss


def label_smooth_loss(pred, target, *, num_classes, smoothing=0.1,
                      loss_weight=1.0, reduction="mean", tile_n=None):
    """pred: (N, C) float (f32 or bf16), target: (N,) int.
    Returns scalar (mean/sum) or (N,) per-row losses ('none')."""
    assert pred.ndim == 2 and pred.shape[-1] == num_classes
    n, c = pred.shape
    confidence = 1.0 - smoothing
    smooth_factor = smoothing / (num_classes - 1)

    # Row-tile size: biggest multiple of 8 whose (tile_n, C) block stays under a
    # conservative per-block budget (double-buffered it fits default scoped VMEM
    # on v5e / v6e / v7x), capped at 1024 rows.
    if tile_n is None:
        itemsize = jnp.dtype(pred.dtype).itemsize
        budget_per_block = 6 * 1024 * 1024
        tile_n = max(8, budget_per_block // max(1, c * itemsize))
        tile_n = min(tile_n, 1024, _round_up(n, 8))
        tile_n = max(8, (tile_n // 8) * 8)

    n_pad = _round_up(n, tile_n)
    num_tiles = n_pad // tile_n

    tgt2d = target.astype(jnp.int32).reshape(n, 1)
    if n_pad != n:
        pred = jnp.pad(pred, ((0, n_pad - n), (0, 0)))
        tgt2d = jnp.pad(tgt2d, ((0, n_pad - n), (0, 0)))

    scalar_out = reduction in ("mean", "sum")
    if scalar_out:
        out_shape = jax.ShapeDtypeStruct((1, 1), jnp.float32)
        out_spec = pl.BlockSpec((1, 1), lambda i: (0, 0))   # resident accumulator
        semantics = ("arbitrary",)
    else:
        out_shape = jax.ShapeDtypeStruct((n_pad, 1), jnp.float32)
        out_spec = pl.BlockSpec((tile_n, 1), lambda i: (i, 0))
        semantics = ("parallel",)

    kernel = functools.partial(
        _label_smooth_kernel,
        confidence=confidence,
        smooth_factor=smooth_factor,
        loss_weight=loss_weight,
        reduction=reduction,
        total_n=n,
    )

    out = pl.pallas_call(
        kernel,
        out_shape=out_shape,
        grid=(num_tiles,),
        in_specs=[
            pl.BlockSpec((tile_n, c), lambda i: (i, 0)),
            pl.BlockSpec((tile_n, 1), lambda i: (i, 0)),
        ],
        out_specs=out_spec,
        compiler_params=pltpu.CompilerParams(
            dimension_semantics=semantics,
            vmem_limit_bytes=32 * 1024 * 1024,
        ),
    )(pred, tgt2d)

    if scalar_out:
        return out[0, 0]
    return out[:n, 0]


def _reference(pred, target, num_classes, smoothing, loss_weight, reduction):
    confidence = 1.0 - smoothing
    smooth_factor = smoothing / (num_classes - 1)
    one_hot = jax.nn.one_hot(target, num_classes, dtype=jnp.float32)
    smooth_t = one_hot * confidence + smooth_factor
    log_prob = jax.nn.log_softmax(pred.astype(jnp.float32), axis=-1)
    loss = -jnp.sum(smooth_t * log_prob, axis=-1)
    if reduction == "mean":
        return loss_weight * loss.mean()
    if reduction == "sum":
        return loss_weight * loss.sum()
    return loss_weight * loss


if __name__ == "__main__":
    num_classes = 16
    batch = 10            # not a multiple of tile_n -> exercises ragged-tile masking
    smoothing = 0.1
    loss_weight = 1.0

    key = jax.random.PRNGKey(0)
    kp, kt = jax.random.split(key)
    pred = jax.random.normal(kp, (batch, num_classes), dtype=jnp.float32)
    target = jax.random.randint(kt, (batch,), 0, num_classes, dtype=jnp.int32)

    # f32 logits, all reductions (tile_n=8 -> 2-step grid, last tile masked)
    for reduction in ("mean", "sum", "none"):
        out = label_smooth_loss(pred, target, num_classes=num_classes,
                                smoothing=smoothing, loss_weight=loss_weight,
                                reduction=reduction, tile_n=8)
        out = jax.block_until_ready(out)
        ref = _reference(pred, target, num_classes, smoothing, loss_weight, reduction)
        assert jnp.allclose(out, ref, atol=1e-5, rtol=1e-5), (reduction, out, ref)

    # bf16 logits (recommended call-site contract: halves HBM read bytes;
    # kernel upcasts to f32 internally)
    pred_bf16 = pred.astype(jnp.bfloat16)
    out = jax.block_until_ready(
        label_smooth_loss(pred_bf16, target, num_classes=num_classes,
                          smoothing=smoothing, loss_weight=loss_weight,
                          reduction="mean", tile_n=8))
    ref = _reference(pred_bf16.astype(jnp.float32), target, num_classes,
                     smoothing, loss_weight, "mean")
    assert jnp.allclose(out, ref, atol=1e-4, rtol=1e-4), (out, ref)

    print("KERNEL_OK")
</pallas_src>

<mosaic_0001>
module attributes {stable_mosaic.version = 11 : i64} {
  func.func @_label_smooth_kernel(%arg0: i32, %arg1: memref<8x16xf32, #tpu.memory_space<vmem>>, %arg2: memref<8x1xi32, #tpu.memory_space<vmem>>, %arg3: memref<1x1xf32, #tpu.memory_space<vmem>>) attributes {dimension_semantics = [#tpu.dimension_semantics<arbitrary>], iteration_bounds = array<i64: 2>, scalar_prefetch = 0 : i64, scratch_operands = 0 : i64, tpu.core_type = #tpu.core_type<tc>, window_params = [{transform_indices = @transform_0, window_bounds = array<i64: 8, 16>}, {transform_indices = @transform_1, window_bounds = array<i64: 8, 1>}, {pipeline_mode = #tpu.pipeline_mode<synchronous>, transform_indices = @transform_2, window_bounds = array<i64: 1, 1>}]} {
    %c0 = arith.constant 0 : index
    %c0_0 = arith.constant 0 : index
    %0 = vector.load %arg1[%c0, %c0_0] : memref<8x16xf32, #tpu.memory_space<vmem>>, vector<8x16xf32>
    %c0_1 = arith.constant 0 : index
    %c0_2 = arith.constant 0 : index
    %1 = vector.load %arg2[%c0_1, %c0_2] : memref<8x1xi32, #tpu.memory_space<vmem>>, vector<8x1xi32>
    %cst = arith.constant dense<0xFF800000> : vector<8xf32>
    %2 = vector.multi_reduction <maximumf>, %0, %cst [1] : vector<8x16xf32> to vector<8xf32>
    %3 = vector.shape_cast %2 : vector<8xf32> to vector<8x1xf32>
    %4 = vector.broadcast %3 : vector<8x1xf32> to vector<8x16xf32>
    %5 = arith.subf %0, %4 : vector<8x16xf32>
    %6 = math.exp %5 : vector<8x16xf32>
    %cst_3 = arith.constant dense<0.000000e+00> : vector<8xf32>
    %7 = vector.multi_reduction <add>, %6, %cst_3 [1] : vector<8x16xf32> to vector<8xf32>
    %8 = vector.shape_cast %7 : vector<8xf32> to vector<8x1xf32>
    %9 = math.log %8 : vector<8x1xf32>
    %10 = arith.addf %3, %9 : vector<8x1xf32>
    %11 = tpu.iota {dimensions = array<i32: 1>} : vector<8x16xi32>
    %12 = vector.broadcast %1 : vector<8x1xi32> to vector<8x16xi32>
    %13 = arith.cmpi eq, %11, %12 : vector<8x16xi32>
    %cst_4 = arith.constant 0.000000e+00 : f32
    %14 = vector.broadcast %cst_4 : f32 to vector<8x16xf32>
    %15 = arith.select %13, %0, %14 : vector<8x16xi1>, vector<8x16xf32>
    %cst_5 = arith.constant dense<0.000000e+00> : vector<8xf32>
    %16 = vector.multi_reduction <add>, %15, %cst_5 [1] : vector<8x16xf32> to vector<8xf32>
    %17 = vector.shape_cast %16 : vector<8xf32> to vector<8x1xf32>
    %cst_6 = arith.constant dense<0.000000e+00> : vector<8xf32>
    %18 = vector.multi_reduction <add>, %0, %cst_6 [1] : vector<8x16xf32> to vector<8xf32>
    %19 = vector.shape_cast %18 : vector<8xf32> to vector<8x1xf32>
    %20 = arith.subf %17, %10 : vector<8x1xf32>
    %cst_7 = arith.constant 0.899999976 : f32
    %21 = vector.broadcast %cst_7 : f32 to vector<8x1xf32>
    %22 = arith.mulf %21, %20 : vector<8x1xf32>
    %cst_8 = arith.constant 1.600000e+01 : f32
    %23 = vector.broadcast %cst_8 : f32 to vector<8x1xf32>
    %24 = arith.mulf %23, %10 : vector<8x1xf32>
    %25 = arith.subf %19, %24 : vector<8x1xf32>
    %cst_9 = arith.constant 0.00666666683 : f32
    %26 = vector.broadcast %cst_9 : f32 to vector<8x1xf32>
    %27 = arith.mulf %26, %25 : vector<8x1xf32>
    %28 = arith.addf %22, %27 : vector<8x1xf32>
    %cst_10 = arith.constant 0.000000e+00 : f32
    %29 = vector.broadcast %cst_10 : f32 to vector<8x1xf32>
    %30 = arith.subf %29, %28 : vector<8x1xf32>
    %c8_i32 = arith.constant 8 : i32
    %31 = arith.muli %arg0, %c8_i32 : i32
    %32 = tpu.iota {dimensions = array<i32: 0>} : vector<8x1xi32>
    %33 = vector.broadcast %31 : i32 to vector<8x1xi32>
    %34 = arith.addi %33, %32 : vector<8x1xi32>
    %c10_i32 = arith.constant 10 : i32
    %35 = vector.broadcast %c10_i32 : i32 to vector<8x1xi32>
    %36 = arith.cmpi slt, %34, %35 : vector<8x1xi32>
    %cst_11 = arith.constant 0.000000e+00 : f32
    %37 = vector.broadcast %cst_11 : f32 to vector<8x1xf32>
    %38 = arith.select %36, %30, %37 : vector<8x1xi1>, vector<8x1xf32>
    %c0_i32 = arith.constant 0 : i32
    %39 = arith.cmpi eq, %arg0, %c0_i32 : i32
    %40 = arith.extui %39 : i1 to i32
    %c0_i32_12 = arith.constant 0 : i32
    %41 = arith.cmpi ne, %40, %c0_i32_12 : i32
    scf.if %41 {
      %cst_19 = arith.constant 0.000000e+00 : f32
      %53 = vector.broadcast %cst_19 : f32 to vector<1x1xf32>
      %c0_20 = arith.constant 0 : index
      %c0_21 = arith.constant 0 : index
      %54 = vector.load %arg3[%c0_20, %c0_21] : memref<1x1xf32, #tpu.memory_space<vmem>>, vector<1x1xf32>
      tpu.vector_store %arg3[%c0_20, %c0_21], %53 {strides = array<i32>} : memref<1x1xf32, #tpu.memory_space<vmem>>, vector<1x1xf32>,
    } else {
    }
    %c0_13 = arith.constant 0 : index
    %c0_14 = arith.constant 0 : index
    %42 = vector.load %arg3[%c0_13, %c0_14] : memref<1x1xf32, #tpu.memory_space<vmem>>, vector<1x1xf32>
    %43 = vector.shape_cast %38 : vector<8x1xf32> to vector<1x8x1xf32>
    %cst_15 = arith.constant dense<0.000000e+00> : vector<1xf32>
    %44 = vector.multi_reduction <add>, %43, %cst_15 [1, 2] : vector<1x8x1xf32> to vector<1xf32>
    %45 = vector.shape_cast %44 : vector<1xf32> to vector<1x1x1xf32>
    %46 = vector.extract %45[0, 0, 0] : f32 from vector<1x1x1xf32>
    %47 = vector.broadcast %46 : f32 to vector<1x1xf32>
    %48 = arith.addf %42, %47 : vector<1x1xf32>
    %c0_16 = arith.constant 0 : index
    %c0_17 = arith.constant 0 : index
    %49 = vector.load %arg3[%c0_16, %c0_17] : memref<1x1xf32, #tpu.memory_space<vmem>>, vector<1x1xf32>
    tpu.vector_store %arg3[%c0_16, %c0_17], %48 {strides = array<i32>} : memref<1x1xf32, #tpu.memory_space<vmem>>, vector<1x1xf32>,
    %c1_i32 = arith.constant 1 : i32
    %50 = arith.cmpi eq, %arg0, %c1_i32 : i32
    %51 = arith.extui %50 : i1 to i32
    %c0_i32_18 = arith.constant 0 : i32
    %52 = arith.cmpi ne, %51, %c0_i32_18 : i32
    scf.if %52 {
      %c0_19 = arith.constant 0 : index
      %c0_20 = arith.constant 0 : index
      %53 = vector.load %arg3[%c0_19, %c0_20] : memref<1x1xf32, #tpu.memory_space<vmem>>, vector<1x1xf32>
      %cst_21 = arith.constant 1.000000e-01 : f32
      %54 = vector.broadcast %cst_21 : f32 to vector<1x1xf32>
      %55 = arith.mulf %53, %54 : vector<1x1xf32>
      %c0_22 = arith.constant 0 : index
      %c0_23 = arith.constant 0 : index
      %56 = vector.load %arg3[%c0_22, %c0_23] : memref<1x1xf32, #tpu.memory_space<vmem>>, vector<1x1xf32>
      tpu.vector_store %arg3[%c0_22, %c0_23], %55 {strides = array<i32>} : memref<1x1xf32, #tpu.memory_space<vmem>>, vector<1x1xf32>,
    } else {
    }
    return
  }
  func.func @transform_0(%arg0: i32) -> (i32, i32) {
    %c0_i32 = arith.constant 0 : i32
    %c0_i32_0 = arith.constant 0 : i32
    return %arg0, %c0_i32 : i32, i32
  }
  func.func @transform_1(%arg0: i32) -> (i32, i32) {
    %c0_i32 = arith.constant 0 : i32
    %c0_i32_0 = arith.constant 0 : i32
    return %arg0, %c0_i32 : i32, i32
  }
  func.func @transform_2(%arg0: i32) -> (i32, i32) {
    %c0_i32 = arith.constant 0 : i32
    %c0_i32_0 = arith.constant 0 : i32
    %c0_i32_1 = arith.constant 0 : i32
    return %c0_i32, %c0_i32_0 : i32, i32
  }
}

</mosaic_0001>

<bundles_post_ra>
// kernel: tpu_custom_call.1
= control target key start
LH: loop header
LB: loop body
LE: loop exit
PB: predicated region body
PF: predicated region fallthrough
CT: control target
= control target key end

     0   :  { %7 = vsyncpa [#allocation3], 0  ;;  %s366_s9 = smov 0   ;;  %s417_s0 = inlined_call_operand.vmem [shape: f32[16,16], index: 0, kind: input, shape index: {}]   ;;  %s418_s1 = inlined_call_operand.vmem [shape: s32[16,1], index: 1, kind: input, shape index: {}]   ;;  %s419_s2 = inlined_call_operand.hbm [shape: f32[1,1], index: 2, kind: output, shape index: {}]  }
   0x1 LB: > { %s372_s10 = sadd.s32 4294967295, %s346_s9   ;;  %p276_p0 = scmp.ge.s32.totalorder %s346_s9, 1  ;;  %s346_s9 = sphi %s366_s9, %s13_s9  }
   0x2   : > { %p116_p1 = scmp.lt.s32.totalorder %s346_s9, 3 }
   0x4   : > { %p117_p2 = pnand %p276_p0, %p116_p1 }
   0x5   : > { %p136_p3 = scmp.lt.s32.totalorder (!%p117_p2), %s372_s10, 1  ;;  %v348_v0 = vmov (!%p117_p2), 0   ;;  %vm146_vm0 = vcmask (!%p117_p2), 130048   ;;  %v159_v7 = vlaneseq (!%p117_p2)  ;;  %s279_s19 = sshll.u32 (!%p117_p2), %s372_s10, 3 }
   0x6   : > { %120 = sbr.rel (%p117_p2) target bundleno = 590 (0x24e), region = 28  ;;  %305 = vset.pattern.permute.xlu0 (!%p117_p2), %v348_v0  ;;  %v182_v24 = vstv (!%p117_p2), %s279_s19  ;;  %p280_p4 = scmp.ne.s32.totalorder (!%p117_p2), %s372_s10, 0 }
   0x7   : > { %v160_v8 = vand.u32 (!%p117_p2), 127, %v159_v7  ;;  %v181_v20 = vshrl.u32 (!%p117_p2), %v159_v7, 7 }
   0x9   : > { %v183_v26 = vadd.s32 (!%p117_p2), %v182_v24, %v181_v20 }
   0xb   : > { %vm184_vm2 = vcmp.lt.s32.totalorder (!%p117_p2), %v183_v26, 10 }
   0xd   : > { %s137_s11 = scalar_select %p136_p3, %s372_s10, 1 }
   0xe   : > { %vm190_vm3 = vcmask (!%p280_p4), 0   ;;  %v349_v32 = vmov (!%p280_p4), 0.0  }
   0xf   : > { %s277_s12 = sshll.u32 %s137_s11, 3  ;;  %191 = vst.msk [vmem:[#allocation2] sm:$0x1] (!%p280_p4), %vm190_vm3, %v349_v32 }
  0x10   : > { %s139_s15 = scalar_lea.vmem %s417_s0, %s277_s12  ;;  %s143_s18 = scalar_lea.vmem %s418_s1, %s277_s12 }
  0x11   : > { %v144_v1 = vld [vmem:[%s139_s15] sm:$0xff] }
  0x12   : > { %v147_v2 = vsel %vm146_vm0, %v144_v1, -inf  ;;  %v145_v3 = vld [vmem:[%s143_s18] sm:$0xff]  ;;  %v169_v14 = vsel %vm146_vm0, %v144_v1, 0.0 }
  0x13   : > { %148 = vmax.xlane.f32.xlu0 %v147_v2 }
  0x29   : > { %162 = vperm.xlu0 %305, %v145_v3  }
  0xa0   : > { %v149_v4 = vpop.xlane.xlu0 %148 }
  0xa1   : > { %v150_v5 = vsub.f32 %v144_v1, %v149_v4 }
  0xa3   : > { %v151_v6 = vmul.f32 1.442695, %v150_v5 }
  0xa5   : > { %306 = vpow2.f32 %v151_v6 }
  0xa8   : > { %v163_v9 = vpop.permute.xlu0 %162 }
  0xa9   : > { %vm164_vm1 = vcmp.eq.s32.totalorder %v160_v8, %v163_v9 }
  0xaa   : > { %v165_v11 = vsel %vm164_vm1, %v144_v1, 0.0 }
  0xab   : > { %v166_v13 = vsel %vm146_vm0, %v165_v11, 0.0 }
  0xaf   : > { %v307_v10 = vpop.eup %306 }
  0xb0   : > { %v153_v12 = vsel %vm146_vm0, %v307_v10, 0.0 }
  0xb1   : > { %154 = vadd.xlane.f32.xlu1 %v153_v12 }
  0xb5   : > { %167 = vadd.xlane.f32.xlu1 %v166_v13 }
  0xb9   : > { %170 = vadd.xlane.f32.xlu1 %v169_v14 }
 0x13e   : > { %v155_v15 = vpop.xlane.xlu1 %154 }
 0x13f   : > { %308 = vlog2.f32 %v155_v15 }
 0x142   : > { %v168_v16 = vpop.xlane.xlu1 %167 }
 0x146   : > { %v171_v21 = vpop.xlane.xlu1 %170 }
 0x149   : > { %v309_v17 = vpop.eup %308 }
 0x14a   : > { %v157_v18 = vmul.f32 0.6931472, %v309_v17 }
 0x14c   : > { %v158_v19 = vadd.f32 %v157_v18, %v149_v4 }
 0x14e   : > { %v172_v22 = vsub.f32 %v168_v16, %v158_v19  ;;  %v174_v23 = vmul.f32 16.0, %v158_v19 }
 0x150   : > { %v175_v25 = vsub.f32 %v171_v21, %v174_v23  ;;  %v173_v27 = vmul.f32 0.9, %v172_v22 }
 0x152   : > { %v176_v28 = vmul.f32 0.006666667, %v175_v25  ;;  %189 = sbr.rel (%p280_p4) target bundleno = 345 (0x159), region = 32 }
 0x154   : > { %v177_v29 = vadd.f32 %v176_v28, %v173_v27 }
 0x156   : > { %v178_v30 = vsub.f32 0.0, %v177_v29 }
 0x158   : > { %v185_v31 = vsel %vm184_vm2, %v178_v30, 0.0 }
 0x159 PF: > { %vm193_vm4 = vcmask 7168   ;;  %v192_v41 = vld [vmem:[#allocation2] sm:$0x1]  ;;  %vm206_vm5 = vcmask 0   ;;  %p281_p5 = scmp.ne.s32.totalorder %s372_s10, 1 }
 0x15a   : > { %v194_v33 = vsel %vm193_vm4, %v185_v31, 0.0 }
 0x15b   : > { %195 = vadd.xlane.f32.xlu0 %v194_v33 }
 0x1e8   : > { %v196_v34 = vpop.xlane.xlu0 %195 }
 0x1e9   : > { %v197_v35 = vrot.slane %v196_v34, 4 }
 0x1eb   : > { %v198_v36 = vadd.f32 %v197_v35, %v196_v34 }
 0x1ed   : > { %v199_v37 = vrot.slane %v198_v36, 2 }
 0x1ef   : > { %v200_v38 = vadd.f32 %v199_v37, %v198_v36 }
 0x1f1   : > { %v201_v39 = vrot.slane %v200_v38, 1 }
 0x1f3   : > { %v202_v40 = vadd.f32 %v201_v39, %v200_v38 }
 0x1f5   : > { %286 = vpush %v202_v40 }
 0x224   : > { %211 = sbr.rel (%p281_p5) target bundleno = 565 (0x235), region = 36 }
 0x226   : > { %s287_s20 = spop %286 }
 0x227   : > { %v204_v42 = vstv %s287_s20 }
 0x228   : > { %v205_v43 = vadd.f32 %v204_v42, %v192_v41 }
 0x22a   : > { %207 = vst.msk [vmem:[#allocation2] sm:$0x1] %vm206_vm5, %v205_v43 }
 0x231   : > { %v212_v44 = vld [vmem:[#allocation2] sm:$0x1] }
 0x232   : > { %v213_v45 = vmul.f32 0.1, %v212_v44 }
 0x234   : > { %214 = vst.msk [vmem:[#allocation2] sm:$0x1] %vm206_vm5, %v213_v45 }
 0x235 PF: > { %p292_p6 = scmp.eq.s32.totalorder %s372_s10, 1  ;;  %s350_s21 = smov [#allocation2]  }
 0x236   : > { %s222_s22 = sshll.u32 %s350_s21, 4  ;;  %s223_s22 = int_to_ptr.vmem [resolvable:$true] %s222_s22 }
 0x237   : > { %s310_s23 = scalar_lea.vmem %s223_s22, 16  ;;  %s316_s24 = scalar_lea.vmem %s223_s22, 32 }
 0x238   : > { %p311_p7 = scmp.ne.s32.totalorder %s223_s22, %s310_s23  ;;  %p317_p10 = scmp.lt.s32.totalorder %s223_s22, %s223_s22 }
 0x239   : > { %p318_p11 = scmp.lt.s32.totalorder %s316_s24, %s310_s23 }
 0x23a   : > { %p312_p8 = pnand %p311_p7, %p292_p6 }
 0x23b   : > { %p319_p12 = por %p318_p11, %p317_p10 }
 0x23c   : > { %p313_p9 = pneg %p312_p8 }
 0x23e   : > { %p320_p13 = pnand %p319_p12, %p313_p9 }
 0x240   : > { %323 = shalt.err (!%p320_p13)
}
 0x241   : > { %s324_s27 = scalar_lea.hbm %s419_s2, 16 }
 0x242   : > { %p325_p0 = scmp.ne.s32.totalorder %s419_s2, %s324_s27  ;;  %p330_p3 = scmp.lt.u32.totalorder %s324_s27, %s419_s2 }
 0x244   : > { %p326_p1 = pnand %p325_p0, %p292_p6 }
 0x246   : > { %p327_p2 = pneg %p326_p1 }
 0x248   : > { %p332_p4 = pnand %p330_p3, %p327_p2 }
 0x24a   : > { %335 = shalt.err (!%p332_p4)
}
 0x24b   : > { %289 = dma.vmem_to_hbm [thread:$0]  (%p292_p6), %s223_s22, 16, %s419_s2, [#allocation3]  }
 0x24c   : > { %341 = dma.done.wait (%p292_p6), [#allocation3], 16  }
 0x24d   : > { %343 = vsyncadd (%p292_p6), [#allocation3], 4294967280 }
 0x24e PF: > { %s13_s9 = sadd.s32 1, %s346_s9  }
 0x24f   : > { %p10_p5 = scmp.ge.s32.totalorder %s13_s9, 4  }
 0x251   :  { %12 = sbr.rel (!%p10_p5) target bundleno = 1 (0x1), region = 66 }
 0x258   :  { %235 = vsyncpa [#allocation3], 1 }
 0x259   :  { %237 = vsyncpa [#allocation3 + $0x1], 1 }

</bundles_post_ra>
